<compile_context>
chip_gen: v7x
topology: tpu7x:2x2x1
jax: 0.10.0
libtpu: 0.0.40
codegen_flags: <defaults>
</compile_context>

<pallas_src>
import jax
import jax.numpy as jnp
from jax.experimental import pallas as pl
from jax.experimental.pallas import tpu as pltpu

STATE_DIM = 4      # CartPole-v1 observation_space.shape[0]
ACTION_DIM = 2     # CartPole-v1 action_space.n
HIDDEN = 128
K_PAD = 8          # layer-1 contraction dim padded to a sublane multiple
OUT_SUB = 8        # output rows (actions) padded to a sublane multiple
LANE = 128


def _round_up(x, m):
    return (x + m - 1) // m * m


def _choose_tile(batch, max_tile=1024):
    """Pick (tile_b, padded_batch).  tile_b is a multiple of 128 lanes and at
    most max_tile; batches spanning more than one tile are split into >= 2
    tiles (v7x megacore), tiny batches stay as a single 128-lane tile."""
    bp_min = _round_up(batch, LANE)
    if bp_min <= LANE:
        return LANE, LANE
    n_tiles = max(2, pl.cdiv(bp_min, max_tile))
    tb = min(_round_up(pl.cdiv(batch, n_tiles), LANE), max_tile)
    bp = _round_up(batch, tb)
    return tb, bp


def dqn_kernel(xT_ref, w1T_ref, b1_ref, w2T_ref, b2_ref, w3T_ref, b3_ref, oT_ref):
    # All operands are transposed: features/actions on sublanes, batch on lanes.
    xT = xT_ref[...].astype(jnp.bfloat16)                     # (K_PAD, TB)

    # Layer 1: (HIDDEN, K_PAD) @ (K_PAD, TB) on the MXU, f32 accumulate.
    h1 = jnp.dot(w1T_ref[...], xT, preferred_element_type=jnp.float32)
    h1 = jnp.maximum(h1 + b1_ref[...], 0.0)                   # (HIDDEN, TB)

    # Layer 2: (HIDDEN, HIDDEN) @ (HIDDEN, TB).
    h2 = jnp.dot(w2T_ref[...], h1.astype(jnp.bfloat16),
                 preferred_element_type=jnp.float32)
    h2 = jnp.maximum(h2 + b2_ref[...], 0.0)                   # (HIDDEN, TB)

    # Layer 3: (OUT_SUB, HIDDEN) @ (HIDDEN, TB); rows padded to 8 sublanes so
    # the store is a small, fully lane-dense (8, TB) slab.
    out = jnp.dot(w3T_ref[...], h2.astype(jnp.bfloat16),
                  preferred_element_type=jnp.float32)
    oT_ref[...] = (out + b3_ref[...]).astype(oT_ref.dtype)


def dqn_forward(x, params, *, max_tile=1024):
    """x: (B, STATE_DIM) f32 -> (B, ACTION_DIM) f32 Q-values."""
    w1T, b1, w2T, b2, w3T, b3 = params
    B = x.shape[0]
    tb, bp = _choose_tile(B, max_tile)

    # Transpose + pad input once in the wrapper: (K_PAD, bp), zero padding in
    # both the feature rows and the extra batch columns.
    xT = jnp.zeros((K_PAD, bp), jnp.float32).at[:STATE_DIM, :B].set(x.T)

    flops = 2 * bp * (K_PAD * HIDDEN + HIDDEN * HIDDEN + HIDDEN * OUT_SUB)
    bytes_accessed = (bp * K_PAD * 4 + bp * OUT_SUB * 4
                      + (w1T.size + w2T.size + w3T.size) * 2
                      + (b1.size + b2.size + b3.size) * 4)
    cost = pl.CostEstimate(flops=flops, transcendentals=0,
                           bytes_accessed=bytes_accessed)

    outT = pl.pallas_call(
        dqn_kernel,
        out_shape=jax.ShapeDtypeStruct((OUT_SUB, bp), jnp.float32),
        grid=(bp // tb,),
        in_specs=[
            pl.BlockSpec((K_PAD, tb), lambda i: (0, i)),         # xT (tiled)
            pl.BlockSpec((HIDDEN, K_PAD), lambda i: (0, 0)),     # w1T resident
            pl.BlockSpec((HIDDEN, 1), lambda i: (0, 0)),         # b1 (column)
            pl.BlockSpec((HIDDEN, HIDDEN), lambda i: (0, 0)),    # w2T (bf16)
            pl.BlockSpec((HIDDEN, 1), lambda i: (0, 0)),         # b2 (column)
            pl.BlockSpec((OUT_SUB, HIDDEN), lambda i: (0, 0)),   # w3T (bf16, padded)
            pl.BlockSpec((OUT_SUB, 1), lambda i: (0, 0)),        # b3 (padded)
        ],
        out_specs=pl.BlockSpec((OUT_SUB, tb), lambda i: (0, i)),
        compiler_params=pltpu.CompilerParams(
            dimension_semantics=("parallel",)),
        cost_estimate=cost,
    )(xT, w1T, b1, w2T, b2, w3T, b3)

    return jnp.transpose(outT[:ACTION_DIM, :B])


def pack_params(w1, b1, w2, b2, w3, b3):
    """Pack PyTorch-layout (out, in) weights / (out,) biases into the kernel
    layout: bf16 weights, layer-1 K padded to 8, layer-3 rows padded to 8,
    f32 column biases."""
    w1T = jnp.zeros((HIDDEN, K_PAD), jnp.bfloat16).at[:, :STATE_DIM].set(
        w1.astype(jnp.bfloat16))
    b1c = b1.reshape(HIDDEN, 1).astype(jnp.float32)
    w2T = w2.astype(jnp.bfloat16)
    b2c = b2.reshape(HIDDEN, 1).astype(jnp.float32)
    w3T = jnp.zeros((OUT_SUB, HIDDEN), jnp.bfloat16).at[:ACTION_DIM, :].set(
        w3.astype(jnp.bfloat16))
    b3c = jnp.zeros((OUT_SUB, 1), jnp.float32).at[:ACTION_DIM, 0].set(b3)
    return (w1T, b1c, w2T, b2c, w3T, b3c)


def init_params(key):
    """PyTorch nn.Linear-style init: W, b ~ U(-1/sqrt(fan_in), +1/sqrt(fan_in))."""
    ks = jax.random.split(key, 6)

    def linear(kw, kb, fan_in, fan_out):
        bound = 1.0 / (fan_in ** 0.5)
        w = jax.random.uniform(kw, (fan_out, fan_in), jnp.float32, -bound, bound)
        b = jax.random.uniform(kb, (fan_out,), jnp.float32, -bound, bound)
        return w, b

    w1, b1 = linear(ks[0], ks[1], STATE_DIM, HIDDEN)
    w2, b2 = linear(ks[2], ks[3], HIDDEN, HIDDEN)
    w3, b3 = linear(ks[4], ks[5], HIDDEN, ACTION_DIM)
    return pack_params(w1, b1, w2, b2, w3, b3)


def dqn_reference(x, params):
    """Pure-JAX reference mirroring the kernel math (bf16 weights, f32 acc)."""
    w1T, b1, w2T, b2, w3T, b3 = params
    xT = jnp.zeros((K_PAD, x.shape[0]), jnp.float32).at[:STATE_DIM].set(x.T)
    h1 = jnp.maximum(
        jnp.dot(w1T, xT.astype(jnp.bfloat16), preferred_element_type=jnp.float32)
        + b1, 0.0)
    h2 = jnp.maximum(
        jnp.dot(w2T, h1.astype(jnp.bfloat16), preferred_element_type=jnp.float32)
        + b2, 0.0)
    out = jnp.dot(w3T, h2.astype(jnp.bfloat16),
                  preferred_element_type=jnp.float32) + b3
    return out[:ACTION_DIM].T


if __name__ == "__main__":
    key = jax.random.PRNGKey(0)
    pkey, xkey1, xkey2 = jax.random.split(key, 3)
    params = init_params(pkey)

    # Small inference-style batch (single grid tile).
    x_small = jax.random.normal(xkey1, (8, STATE_DIM), jnp.float32)
    out_small = dqn_forward(x_small, params)
    jax.block_until_ready(out_small)
    assert out_small.shape == (8, ACTION_DIM)
    assert jnp.allclose(out_small, dqn_reference(x_small, params),
                        atol=1e-2, rtol=1e-2)

    # Replay-batch-style input: exercises 2 grid tiles + batch padding.
    x_big = jax.random.normal(xkey2, (160, STATE_DIM), jnp.float32)
    out_big = dqn_forward(x_big, params)
    jax.block_until_ready(out_big)
    assert out_big.shape == (160, ACTION_DIM)
    assert jnp.allclose(out_big, dqn_reference(x_big, params),
                        atol=1e-2, rtol=1e-2)

    print("KERNEL_OK")
</pallas_src>

<mosaic_0001>
module attributes {stable_mosaic.version = 11 : i64} {
  func.func @dqn_kernel(%arg0: i32, %arg1: memref<8x128xf32, #tpu.memory_space<vmem>>, %arg2: memref<128x8xbf16, #tpu.memory_space<vmem>>, %arg3: memref<128x1xf32, #tpu.memory_space<vmem>>, %arg4: memref<128x128xbf16, #tpu.memory_space<vmem>>, %arg5: memref<128x1xf32, #tpu.memory_space<vmem>>, %arg6: memref<8x128xbf16, #tpu.memory_space<vmem>>, %arg7: memref<8x1xf32, #tpu.memory_space<vmem>>, %arg8: memref<8x128xf32, #tpu.memory_space<vmem>>) attributes {dimension_semantics = [#tpu.dimension_semantics<parallel>], iteration_bounds = array<i64: 1>, scalar_prefetch = 0 : i64, scratch_operands = 0 : i64, tpu.core_type = #tpu.core_type<tc>, window_params = [{transform_indices = @transform_0, window_bounds = array<i64: 8, 128>}, {pipeline_mode = #tpu.pipeline_mode<synchronous>, transform_indices = @transform_1, window_bounds = array<i64: 128, 8>}, {pipeline_mode = #tpu.pipeline_mode<synchronous>, transform_indices = @transform_2, window_bounds = array<i64: 128, 1>}, {pipeline_mode = #tpu.pipeline_mode<synchronous>, transform_indices = @transform_3, window_bounds = array<i64: 128, 128>}, {pipeline_mode = #tpu.pipeline_mode<synchronous>, transform_indices = @transform_4, window_bounds = array<i64: 128, 1>}, {pipeline_mode = #tpu.pipeline_mode<synchronous>, transform_indices = @transform_5, window_bounds = array<i64: 8, 128>}, {pipeline_mode = #tpu.pipeline_mode<synchronous>, transform_indices = @transform_6, window_bounds = array<i64: 8, 1>}, {transform_indices = @transform_7, window_bounds = array<i64: 8, 128>}]} {
    %c0 = arith.constant 0 : index
    %c0_0 = arith.constant 0 : index
    %0 = vector.load %arg1[%c0, %c0_0] : memref<8x128xf32, #tpu.memory_space<vmem>>, vector<8x128xf32>
    %1 = arith.truncf %0 : vector<8x128xf32> to vector<8x128xbf16>
    %c0_1 = arith.constant 0 : index
    %c0_2 = arith.constant 0 : index
    %2 = vector.load %arg2[%c0_1, %c0_2] : memref<128x8xbf16, #tpu.memory_space<vmem>>, vector<128x8xbf16>
    %cst = arith.constant dense<0.000000e+00> : vector<128x128xf32>
    %3 = tpu.matmul %2, %1, %cst {dimension_numbers = #tpu.dot_dimension_numbers<[1], [0], [0], [1], [0, 0, 1, 1], [], []>} : vector<128x8xbf16>, vector<8x128xbf16>, vector<128x128xf32> -> vector<128x128xf32>
    %c0_3 = arith.constant 0 : index
    %c0_4 = arith.constant 0 : index
    %4 = vector.load %arg3[%c0_3, %c0_4] : memref<128x1xf32, #tpu.memory_space<vmem>>, vector<128x1xf32>
    %5 = vector.broadcast %4 : vector<128x1xf32> to vector<128x128xf32>
    %6 = arith.addf %3, %5 : vector<128x128xf32>
    %cst_5 = arith.constant 0.000000e+00 : f32
    %7 = vector.broadcast %cst_5 : f32 to vector<128x128xf32>
    %8 = arith.maximumf %6, %7 : vector<128x128xf32>
    %c0_6 = arith.constant 0 : index
    %c0_7 = arith.constant 0 : index
    %9 = vector.load %arg4[%c0_6, %c0_7] : memref<128x128xbf16, #tpu.memory_space<vmem>>, vector<128x128xbf16>
    %10 = arith.truncf %8 : vector<128x128xf32> to vector<128x128xbf16>
    %cst_8 = arith.constant dense<0.000000e+00> : vector<128x128xf32>
    %11 = tpu.matmul %9, %10, %cst_8 {dimension_numbers = #tpu.dot_dimension_numbers<[1], [0], [0], [1], [0, 0, 1, 1], [], []>} : vector<128x128xbf16>, vector<128x128xbf16>, vector<128x128xf32> -> vector<128x128xf32>
    %c0_9 = arith.constant 0 : index
    %c0_10 = arith.constant 0 : index
    %12 = vector.load %arg5[%c0_9, %c0_10] : memref<128x1xf32, #tpu.memory_space<vmem>>, vector<128x1xf32>
    %13 = vector.broadcast %12 : vector<128x1xf32> to vector<128x128xf32>
    %14 = arith.addf %11, %13 : vector<128x128xf32>
    %cst_11 = arith.constant 0.000000e+00 : f32
    %15 = vector.broadcast %cst_11 : f32 to vector<128x128xf32>
    %16 = arith.maximumf %14, %15 : vector<128x128xf32>
    %c0_12 = arith.constant 0 : index
    %c0_13 = arith.constant 0 : index
    %17 = vector.load %arg6[%c0_12, %c0_13] : memref<8x128xbf16, #tpu.memory_space<vmem>>, vector<8x128xbf16>
    %18 = arith.truncf %16 : vector<128x128xf32> to vector<128x128xbf16>
    %cst_14 = arith.constant dense<0.000000e+00> : vector<8x128xf32>
    %19 = tpu.matmul %17, %18, %cst_14 {dimension_numbers = #tpu.dot_dimension_numbers<[1], [0], [0], [1], [0, 0, 1, 1], [], []>} : vector<8x128xbf16>, vector<128x128xbf16>, vector<8x128xf32> -> vector<8x128xf32>
    %c0_15 = arith.constant 0 : index
    %c0_16 = arith.constant 0 : index
    %20 = vector.load %arg7[%c0_15, %c0_16] : memref<8x1xf32, #tpu.memory_space<vmem>>, vector<8x1xf32>
    %21 = vector.broadcast %20 : vector<8x1xf32> to vector<8x128xf32>
    %22 = arith.addf %19, %21 : vector<8x128xf32>
    %c0_17 = arith.constant 0 : index
    %c0_18 = arith.constant 0 : index
    %23 = vector.load %arg8[%c0_17, %c0_18] : memref<8x128xf32, #tpu.memory_space<vmem>>, vector<8x128xf32>
    tpu.vector_store %arg8[%c0_17, %c0_18], %22 {strides = array<i32>} : memref<8x128xf32, #tpu.memory_space<vmem>>, vector<8x128xf32>,
    return
  }
  func.func @transform_0(%arg0: i32) -> (i32, i32) {
    %c0_i32 = arith.constant 0 : i32
    %c0_i32_0 = arith.constant 0 : i32
    return %c0_i32, %arg0 : i32, i32
  }
  func.func @transform_1(%arg0: i32) -> (i32, i32) {
    %c0_i32 = arith.constant 0 : i32
    %c0_i32_0 = arith.constant 0 : i32
    %c0_i32_1 = arith.constant 0 : i32
    return %c0_i32, %c0_i32_0 : i32, i32
  }
  func.func @transform_2(%arg0: i32) -> (i32, i32) {
    %c0_i32 = arith.constant 0 : i32
    %c0_i32_0 = arith.constant 0 : i32
    %c0_i32_1 = arith.constant 0 : i32
    return %c0_i32, %c0_i32_0 : i32, i32
  }
  func.func @transform_3(%arg0: i32) -> (i32, i32) {
    %c0_i32 = arith.constant 0 : i32
    %c0_i32_0 = arith.constant 0 : i32
    %c0_i32_1 = arith.constant 0 : i32
    return %c0_i32, %c0_i32_0 : i32, i32
  }
  func.func @transform_4(%arg0: i32) -> (i32, i32) {
    %c0_i32 = arith.constant 0 : i32
    %c0_i32_0 = arith.constant 0 : i32
    %c0_i32_1 = arith.constant 0 : i32
    return %c0_i32, %c0_i32_0 : i32, i32
  }
  func.func @transform_5(%arg0: i32) -> (i32, i32) {
    %c0_i32 = arith.constant 0 : i32
    %c0_i32_0 = arith.constant 0 : i32
    %c0_i32_1 = arith.constant 0 : i32
    return %c0_i32, %c0_i32_0 : i32, i32
  }
  func.func @transform_6(%arg0: i32) -> (i32, i32) {
    %c0_i32 = arith.constant 0 : i32
    %c0_i32_0 = arith.constant 0 : i32
    %c0_i32_1 = arith.constant 0 : i32
    return %c0_i32, %c0_i32_0 : i32, i32
  }
  func.func @transform_7(%arg0: i32) -> (i32, i32) {
    %c0_i32 = arith.constant 0 : i32
    %c0_i32_0 = arith.constant 0 : i32
    return %c0_i32, %arg0 : i32, i32
  }
}

</mosaic_0001>

<bundles_post_ra>
// kernel: tpu_custom_call.1
= control target key start
LH: loop header
LB: loop body
LE: loop exit
PB: predicated region body
PF: predicated region fallthrough
CT: control target
= control target key end

     0   :  { %vm207_vm0 = vcmask 1043456   ;;  %vm182_vm1 = vcmask 64512   ;;  %v850_v6 = vmov 0   ;;  %s1076_s0 = inlined_call_operand.vmem [shape: f32[8,128], index: 0, kind: input, shape index: {}]   ;;  %s1077_s1 = inlined_call_operand.vmem [shape: bf16[128,8], index: 1, kind: input, shape index: {}]   ;;  %s1078_s2 = inlined_call_operand.vmem [shape: f32[128,1], index: 2, kind: input, shape index: {}]   ;;  %s1079_s3 = inlined_call_operand.vmem [shape: bf16[128,128], index: 3, kind: input, shape index: {}]   ;;  %s1080_s4 = inlined_call_operand.vmem [shape: f32[128,1], index: 4, kind: input, shape index: {}]   ;;  %s1081_s5 = inlined_call_operand.vmem [shape: bf16[8,128], index: 5, kind: input, shape index: {}]   ;;  %s1082_s6 = inlined_call_operand.vmem [shape: f32[8,1], index: 6, kind: input, shape index: {}]   ;;  %s1083_s7 = inlined_call_operand.hbm [shape: f32[8,128], index: 7, kind: output, shape index: {}]  }
   0x1   :  { %v28_v0 = vld [vmem:[%s1076_s0] sm:$0xff]  ;;  %v811_v4 = vld [vmem:[%s1077_s1 + $0x8] sm:$0xff]   ;;  %v812_v5 = vld [vmem:[%s1077_s1 + $0x10] sm:$0xff]   ;;  %808 = vset.pattern.permute.xlu0 %v850_v6  ;;  %809 = vset.pattern.permute.xlu1 %v850_v6 }
   0x2   :  { %v29_v1 = vpack.c.bf16 %v28_v0, %v28_v0  ;;  %v810_v2 = vld [vmem:[%s1077_s1] sm:$0xff]   ;;  %v47_v8 = vld [vmem:[%s1078_s2 + $0x8] sm:$0xff]  ;;  %v48_v9 = vld [vmem:[%s1078_s2 + $0x10] sm:$0xff] }
   0x3   :  { %735 = vmatprep.mubr.msk.bf16.mxu0 %vm182_vm1, %v810_v2  ;;  %v46_v7 = vld [vmem:[%s1078_s2] sm:$0xff]  ;;  %74 = vperm.xlu1 %809, %v48_v9   ;;  %v813_v10 = vld [vmem:[%s1077_s1 + $0x18] sm:$0xff]   ;;  %v51_v14 = vld [vmem:[%s1078_s2 + $0x28] sm:$0xff] }
   0x4   :  { %803 = vmatprep.subr.msk.bf16.mxu0 %vm207_vm0, %v29_v1  ;;  %v209_v3 = vsel %vm207_vm0, %v29_v1, 0  ;;  %64 = vperm.xlu0 %808, %v46_v7   ;;  %v49_v11 = vld [vmem:[%s1078_s2 + $0x18] sm:$0xff]  ;;  %v814_v12 = vld [vmem:[%s1077_s1 + $0x20] sm:$0xff]   ;;  %v52_v15 = vld [vmem:[%s1078_s2 + $0x30] sm:$0xff] }
   0x5   :  { %734 = vmatpush3.bf16.msra.mxu0 %v209_v3  ;;  %v50_v13 = vld [vmem:[%s1078_s2 + $0x20] sm:$0xff]  ;;  %v815_v16 = vld [vmem:[%s1077_s1 + $0x28] sm:$0xff]   ;;  %v816_v17 = vld [vmem:[%s1077_s1 + $0x30] sm:$0xff]  }
   0x6   :  { %v54_v18 = vld [vmem:[%s1078_s2 + $0x40] sm:$0xff]  ;;  %v53_v19 = vld [vmem:[%s1078_s2 + $0x38] sm:$0xff]  ;;  %v55_v20 = vld [vmem:[%s1078_s2 + $0x48] sm:$0xff] }
   0x7   :  { %79 = vperm.xlu1 %809, %v49_v11   ;;  %v56_v21 = vld [vmem:[%s1078_s2 + $0x50] sm:$0xff] }
   0x8   :  { %736 = vmatmul.mubr.msk.bf16.vlgmr.msra.gmra.mrb[0].mxu0 %vm182_vm1, %v811_v4  ;;  %69 = vperm.xlu0 %808, %v47_v8  }
   0x9   :  { %739 = vmatprep.mubr.msk.bf16.mxu0 %vm182_vm1, %v812_v5 }
   0xb   :  { %89 = vperm.xlu1 %809, %v51_v14  }
   0xc   :  { %84 = vperm.xlu0 %808, %v50_v13  }
   0xf   :  { %99 = vperm.xlu1 %809, %v53_v19  }
  0x10   :  { %740 = vmatmul.mubr.msk.bf16.gmra.mrb[4].mxu0 %vm182_vm1, %v813_v10  ;;  %94 = vperm.xlu0 %808, %v52_v15  }
  0x11   :  { %743 = vmatprep.mubr.msk.bf16.mxu0 %vm182_vm1, %v814_v12 }
  0x14   :  { %104 = vperm.xlu0 %808, %v54_v18  }
  0x18   :  { %744 = vmatmul.mubr.msk.bf16.gmra.mrb[8].mxu0 %vm182_vm1, %v815_v16 }
  0x19   :  { %747 = vmatprep.mubr.msk.bf16.mxu0 %vm182_vm1, %v816_v17 }
  0x1a   :  { %12 = vsyncpa [#allocation3], 0  ;;  %109 = vperm.xlu1 %809, %v55_v20   ;;  %v817_v22 = vld [vmem:[%s1077_s1 + $0x38] sm:$0xff]   ;;  %114 = vperm.xlu0 %808, %v56_v21   ;;  %v58_v24 = vld [vmem:[%s1078_s2 + $0x60] sm:$0xff]  ;;  %vm852_vm2 = vmmov 0   ;;  %s853_s23 = smov [#allocation2]  }
  0x1b   :  { %v57_v23 = vld [vmem:[%s1078_s2 + $0x58] sm:$0xff]  ;;  %v59_v25 = vld [vmem:[%s1078_s2 + $0x68] sm:$0xff]  ;;  %v60_v26 = vld [vmem:[%s1078_s2 + $0x70] sm:$0xff]  ;;  %s667_s1 = sshll.u32 %s853_s23, 4  ;;  %s668_s1 = int_to_ptr.vmem [resolvable:$true] %s667_s1 }
  0x1c   :  { %v61_v27 = vld [vmem:[%s1078_s2 + $0x78] sm:$0xff]  ;;  %v348_v28 = vld [vmem:[%s1080_s4] sm:$0xff]  ;;  %v349_v29 = vld [vmem:[%s1080_s4 + $0x8] sm:$0xff]  ;;  %s826_s24 = scalar_lea.vmem %s668_s1, 128  ;;  %p831_p1 = scmp.lt.s32.totalorder %s668_s1, %s668_s1 }
  0x1d   :  { %v350_v30 = vld [vmem:[%s1080_s4 + $0x10] sm:$0xff]  ;;  %v351_v31 = vld [vmem:[%s1080_s4 + $0x18] sm:$0xff]  ;;  %v352_v32 = vld [vmem:[%s1080_s4 + $0x20] sm:$0xff]  ;;  %p827_p0 = scmp.ne.s32.totalorder %s668_s1, %s826_s24  ;;  %p832_p2 = scmp.lt.s32.totalorder %s826_s24, %s826_s24 }
  0x1e   :  { %119 = vperm.xlu1 %809, %v57_v23   ;;  %124 = vperm.xlu0 %808, %v58_v24   ;;  %v353_v33 = vld [vmem:[%s1080_s4 + $0x28] sm:$0xff]  ;;  %v354_v34 = vld [vmem:[%s1080_s4 + $0x30] sm:$0xff]  ;;  %v355_v35 = vld [vmem:[%s1080_s4 + $0x38] sm:$0xff] }
  0x1f   :  { %v356_v36 = vld [vmem:[%s1080_s4 + $0x40] sm:$0xff]  ;;  %v357_v37 = vld [vmem:[%s1080_s4 + $0x48] sm:$0xff]  ;;  %v358_v38 = vld [vmem:[%s1080_s4 + $0x50] sm:$0xff]  ;;  %p833_p3 = por %p832_p2, %p831_p1 }
  0x20   :  { %748 = vmatmul.mubr.msk.bf16.gmra.mrb[12].mxu0 %vm182_vm1, %v817_v22  ;;  %v359_v39 = vld [vmem:[%s1080_s4 + $0x58] sm:$0xff]  ;;  %v360_v40 = vld [vmem:[%s1080_s4 + $0x60] sm:$0xff]  ;;  %v361_v41 = vld [vmem:[%s1080_s4 + $0x68] sm:$0xff] }
  0x21   :  { %v362_v42 = vld [vmem:[%s1080_s4 + $0x70] sm:$0xff]  ;;  %v363_v43 = vld [vmem:[%s1080_s4 + $0x78] sm:$0xff]  ;;  %v614_v44 = vld [vmem:[%s1082_s6] sm:$0xff]  ;;  %p834_p4 = pnand %p833_p3, %p827_p0 }
  0x22   :  { %129 = vperm.xlu1 %809, %v59_v25   ;;  %134 = vperm.xlu0 %808, %v60_v26   ;;  %v818_v45 = vld [vmem:[%s1079_s3] sm:$0xff]  }
  0x23   :  { %767 = vmatprep.mubr.bf16.mxu1 %v818_v45 }
  0x26   :  { %139 = vperm.xlu1 %809, %v61_v27   ;;  %366 = vperm.xlu0 %808, %v348_v28  }
  0x2a   :  { %371 = vperm.xlu1 %809, %v349_v29   ;;  %376 = vperm.xlu0 %808, %v350_v30  }
  0x2e   :  { %381 = vperm.xlu1 %809, %v351_v31   ;;  %386 = vperm.xlu0 %808, %v352_v32  }
  0x32   :  { %391 = vperm.xlu1 %809, %v353_v33   ;;  %396 = vperm.xlu0 %808, %v354_v34  }
  0x36   :  { %401 = vperm.xlu1 %809, %v355_v35   ;;  %406 = vperm.xlu0 %808, %v356_v36  }
  0x3a   :  { %411 = vperm.xlu1 %809, %v357_v37   ;;  %416 = vperm.xlu0 %808, %v358_v38  }
  0x3e   :  { %421 = vperm.xlu1 %809, %v359_v39   ;;  %426 = vperm.xlu0 %808, %v360_v40  }
  0x42   :  { %431 = vperm.xlu1 %809, %v361_v41   ;;  %436 = vperm.xlu0 %808, %v362_v42  }
  0x46   :  { %441 = vperm.xlu1 %809, %v363_v43   ;;  %617 = vperm.xlu0 %808, %v614_v44  }
  0x82   :  { %v75_v47 = vpop.permute.xlu1 %74 }
  0x83   :  { %v65_v46 = vpop.permute.xlu0 %64 }
  0x86   :  { %v80_v49 = vpop.permute.xlu1 %79 }
  0x87   :  { %v70_v48 = vpop.permute.xlu0 %69 }
  0x8a   :  { %v90_v51 = vpop.permute.xlu1 %89 }
  0x8b   :  { %v85_v50 = vpop.permute.xlu0 %84 }
  0x8e   :  { %v100_v56 = vpop.permute.xlu1 %99 }
  0x8f   :  { %v95_v52 = vpop.permute.xlu0 %94 }
  0x93   :  { %v105_v0 = vpop.permute.xlu0 %104 }
  0x99   :  { %v110_v4 = vpop.permute.xlu1 %109  ;;  %v115_v13 = vpop.permute.xlu0 %114 }
  0x9d   :  { %v120_v17 = vpop.permute.xlu1 %119  ;;  %v125_v25 = vpop.permute.xlu0 %124 }
  0xa1   :  { %v130_v30 = vpop.permute.xlu1 %129  ;;  %v135_v37 = vpop.permute.xlu0 %134 }
  0xa5   :  { %v140_v42 = vpop.permute.xlu1 %139 }
  0xdb   :  { %v737_v53 = vpop.f32.mrb[0].mxu0 }
  0xdc   :  { %v254_v54 = vadd.f32 %v737_v53, %v75_v47  ;;  %v245_v55 = vpop.f32.mrb[1].mxu0 }
  0xdd   :  { %v246_v57 = vadd.f32 %v245_v55, %v65_v46  ;;  %v738_v58 = vpop.f32.mrb[2].mxu0  ;;  %v820_v55 = vld [vmem:[%s1079_s3 + $0x10] sm:$0xff]  }
  0xde   :  { %v257_v59 = vadd.f32 %v738_v58, %v80_v49  ;;  %v248_v60 = vpop.f32.mrb[3].mxu0  ;;  %v310_v62 = vmax.f32 %v254_v54, 0.0  ;;  %v819_v54 = vld [vmem:[%s1079_s3 + $0x8] sm:$0xff]  }
  0xdf   :  { %v249_v61 = vadd.f32 %v248_v60, %v70_v48  ;;  %v308_v1 = vmax.f32 %v246_v57, 0.0  ;;  %v822_v57 = vld [vmem:[%s1079_s3 + $0x20] sm:$0xff]   ;;  %v823_v58 = vld [vmem:[%s1079_s3 + $0x28] sm:$0xff]   ;;  %v825_v60 = vld [vmem:[%s1079_s3 + $0x38] sm:$0xff]  }
  0xe0   :  { %v311_v63 = vmax.f32 %v257_v59, 0.0  ;;  %v824_v59 = vld [vmem:[%s1079_s3 + $0x30] sm:$0xff]  }
  0xe1   :  { %v309_v2 = vmax.f32 %v249_v61, 0.0  ;;  %v851_v61 = vmov 0.0  }
  0xe2   :  { %v341_v3 = vpack.c.bf16 %v311_v63, %v310_v62  ;;  %783 = vmatprep.subr.bf16.mxu0 %v851_v61  ;;  %799 = vmatprep.mubr.msk.bf16.mxu0 %vm852_vm2, %v851_v61  ;;  %v367_v62 = vpop.permute.xlu0 %366  ;;  %v372_v63 = vpop.permute.xlu1 %371 }
  0xe3   :  { %v741_v5 = vpop.f32.mrb[4].mxu0  ;;  %v340_v6 = vpack.c.bf16 %v309_v2, %v308_v1 }
  0xe4   :  { %v270_v7 = vadd.f32 %v741_v5, %v95_v52  ;;  %v261_v8 = vpop.f32.mrb[5].mxu0 }
  0xe5   :  { %v262_v9 = vadd.f32 %v261_v8, %v85_v50  ;;  %v742_v10 = vpop.f32.mrb[6].mxu0  ;;  %751 = vmatprep.subr.bf16.mxu1 %v340_v6 }
  0xe6   :  { %v273_v11 = vadd.f32 %v742_v10, %v100_v56  ;;  %v264_v12 = vpop.f32.mrb[7].mxu0  ;;  %752 = vmatpush3.bf16.msra.mxu1 %v340_v6  ;;  %v314_v15 = vmax.f32 %v270_v7, 0.0  ;;  %v821_v56 = vld [vmem:[%s1079_s3 + $0x18] sm:$0xff]   ;;  %v382_v1 = vpop.permute.xlu1 %381 }
  0xe7   :  { %v265_v14 = vadd.f32 %v264_v12, %v90_v51  ;;  %753 = vmatprep.subr.bf16.mxu1 %v341_v3  ;;  %v312_v18 = vmax.f32 %v262_v9, 0.0 }
  0xe8   :  { %v315_v16 = vmax.f32 %v273_v11, 0.0 }
  0xe9   :  { %v313_v19 = vmax.f32 %v265_v14, 0.0 }
  0xea   :  { %v343_v20 = vpack.c.bf16 %v315_v16, %v314_v15  ;;  %754 = vmatpush3.bf16.msra.mxu1 %v341_v3  ;;  %v392_v3 = vpop.permute.xlu1 %391 }
  0xeb   :  { %v342_v21 = vpack.c.bf16 %v313_v19, %v312_v18  ;;  %v745_v22 = vpop.f32.mrb[8].mxu0 }
  0xec   :  { %v286_v23 = vadd.f32 %v745_v22, %v115_v13  ;;  %v277_v24 = vpop.f32.mrb[9].mxu0 }
  0xed   :  { %v278_v26 = vadd.f32 %v277_v24, %v105_v0  ;;  %v746_v27 = vpop.f32.mrb[10].mxu0  ;;  %755 = vmatprep.subr.bf16.mxu1 %v342_v21  ;;  %v377_v0 = vpop.permute.xlu0 %376 }
  0xee   :  { %v289_v28 = vadd.f32 %v746_v27, %v120_v17  ;;  %v280_v29 = vpop.f32.mrb[11].mxu0  ;;  %756 = vmatpush3.bf16.msra.mxu1 %v342_v21  ;;  %v318_v32 = vmax.f32 %v286_v23, 0.0  ;;  %v402_v8 = vpop.permute.xlu1 %401 }
  0xef   :  { %v281_v31 = vadd.f32 %v280_v29, %v110_v4  ;;  %757 = vmatprep.subr.bf16.mxu1 %v343_v20  ;;  %v316_v34 = vmax.f32 %v278_v26, 0.0 }
  0xf0   :  { %v319_v33 = vmax.f32 %v289_v28, 0.0 }
  0xf1   :  { %v317_v35 = vmax.f32 %v281_v31, 0.0  ;;  %v387_v2 = vpop.permute.xlu0 %386 }
  0xf2   :  { %v345_v36 = vpack.c.bf16 %v319_v33, %v318_v32  ;;  %758 = vmatpush3.bf16.msra.mxu1 %v343_v20  ;;  %v412_v20 = vpop.permute.xlu1 %411 }
  0xf3   :  { %v344_v38 = vpack.c.bf16 %v317_v35, %v316_v34  ;;  %v749_v39 = vpop.f32.mrb[12].mxu0 }
  0xf4   :  { %v302_v40 = vadd.f32 %v749_v39, %v135_v37  ;;  %v293_v41 = vpop.f32.mrb[13].mxu0 }
  0xf5   :  { %v294_v43 = vadd.f32 %v293_v41, %v125_v25  ;;  %v750_v44 = vpop.f32.mrb[14].mxu0  ;;  %759 = vmatprep.subr.bf16.mxu1 %v344_v38  ;;  %v397_v4 = vpop.permute.xlu0 %396 }
  0xf6   :  { %v305_v45 = vadd.f32 %v750_v44, %v140_v42  ;;  %v296_v46 = vpop.f32.mrb[15].mxu0  ;;  %760 = vmatpush3.bf16.msra.mxu1 %v344_v38  ;;  %v322_v48 = vmax.f32 %v302_v40, 0.0  ;;  %v422_v33 = vpop.permute.xlu1 %421 }
  0xf7   :  { %v297_v47 = vadd.f32 %v296_v46, %v130_v30  ;;  %761 = vmatprep.subr.bf16.mxu1 %v345_v36  ;;  %v320_v50 = vmax.f32 %v294_v43, 0.0 }
  0xf8   :  { %v323_v49 = vmax.f32 %v305_v45, 0.0 }
  0xf9   :  { %v321_v51 = vmax.f32 %v297_v47, 0.0  ;;  %v407_v16 = vpop.permute.xlu0 %406 }
  0xfa   :  { %v347_v52 = vpack.c.bf16 %v323_v49, %v322_v48  ;;  %762 = vmatpush3.bf16.msra.mxu1 %v345_v36  ;;  %v432_v46 = vpop.permute.xlu1 %431 }
  0xfb   :  { %v346_v53 = vpack.c.bf16 %v321_v51, %v320_v50 }
  0xfd   :  { %763 = vmatprep.subr.bf16.mxu1 %v346_v53  ;;  %v417_v29 = vpop.permute.xlu0 %416 }
  0xfe   :  { %764 = vmatpush3.bf16.msra.mxu1 %v346_v53 }
  0xff   :  { %765 = vmatprep.subr.bf16.mxu1 %v347_v52 }
 0x101   :  { %v427_v41 = vpop.permute.xlu0 %426 }
 0x102   :  { %766 = vmatpush3.bf16.msra.mxu1 %v347_v52 }
 0x105   :  { %768 = vmatmul.mubr.bf16.vlgmr.msra.gmra.mrb[0].mxu1 %v819_v54  ;;  %v437_v53 = vpop.permute.xlu0 %436 }
 0x106   :  { %771 = vmatprep.mubr.bf16.mxu1 %v820_v55 }
 0x10d   :  { %772 = vmatmul.mubr.bf16.gmra.mrb[4].mxu1 %v821_v56 }
 0x10e   :  { %775 = vmatprep.mubr.bf16.mxu1 %v822_v57 }
 0x115   :  { %776 = vmatmul.mubr.bf16.gmra.mrb[8].mxu1 %v823_v58  ;;  %v442_v58 = vpop.permute.xlu1 %441 }
 0x116   :  { %779 = vmatprep.mubr.bf16.mxu1 %v824_v59 }
 0x11d   :  { %780 = vmatmul.mubr.bf16.gmra.mrb[12].mxu1 %v825_v60 }
 0x1d8   :  { %v769_v5 = vpop.f32.mrb[0].mxu1 }
 0x1d9   :  { %v535_v6 = vadd.f32 %v769_v5, %v377_v0  ;;  %v526_v7 = vpop.f32.mrb[1].mxu1 }
 0x1da   :  { %v527_v9 = vadd.f32 %v526_v7, %v367_v62  ;;  %v770_v10 = vpop.f32.mrb[2].mxu1  ;;  %v605_v7 = vld [vmem:[%s1081_s5] sm:$0xf] }
 0x1db   :  { %v538_v11 = vadd.f32 %v770_v10, %v382_v1  ;;  %v529_v12 = vpop.f32.mrb[3].mxu1  ;;  %v591_v14 = vmax.f32 %v535_v6, 0.0 }
 0x1dc   :  { %v530_v13 = vadd.f32 %v529_v12, %v372_v63  ;;  %v589_v17 = vmax.f32 %v527_v9, 0.0 }
 0x1dd   :  { %v592_v15 = vmax.f32 %v538_v11, 0.0 }
 0x1de   :  { %v590_v18 = vmax.f32 %v530_v13, 0.0 }
 0x1df   :  { %v607_v19 = vpack.c.bf16 %v592_v15, %v591_v14 }
 0x1e0   :  { %v606_v21 = vpack.c.bf16 %v590_v18, %v589_v17  ;;  %v773_v22 = vpop.f32.mrb[4].mxu1 }
 0x1e1   :  { %v551_v23 = vadd.f32 %v773_v22, %v397_v4  ;;  %v542_v24 = vpop.f32.mrb[5].mxu1 }
 0x1e2   :  { %v543_v25 = vadd.f32 %v542_v24, %v387_v2  ;;  %v774_v26 = vpop.f32.mrb[6].mxu1  ;;  %784 = vmatpush3.bf16.msra.mxu0 %v606_v21 }
 0x1e3   :  { %v554_v27 = vadd.f32 %v774_v26, %v402_v8  ;;  %v545_v28 = vpop.f32.mrb[7].mxu1  ;;  %785 = vmatprep.subr.bf16.mxu0 %v851_v61  ;;  %v595_v31 = vmax.f32 %v551_v23, 0.0  ;;  %v618_v8 = vpop.permute.xlu0 %617 }
 0x1e4   :  { %v546_v30 = vadd.f32 %v545_v28, %v392_v3  ;;  %v593_v34 = vmax.f32 %v543_v25, 0.0 }
 0x1e5   :  { %v596_v32 = vmax.f32 %v554_v27, 0.0 }
 0x1e6   :  { %v594_v35 = vmax.f32 %v546_v30, 0.0  ;;  %786 = vmatpush3.bf16.msra.mxu0 %v607_v19 }
 0x1e7   :  { %v609_v36 = vpack.c.bf16 %v596_v32, %v595_v31  ;;  %787 = vmatprep.subr.bf16.mxu0 %v851_v61 }
 0x1e8   :  { %v608_v37 = vpack.c.bf16 %v594_v35, %v593_v34  ;;  %v777_v38 = vpop.f32.mrb[8].mxu1 }
 0x1e9   :  { %v567_v39 = vadd.f32 %v777_v38, %v417_v29  ;;  %v558_v40 = vpop.f32.mrb[9].mxu1 }
 0x1ea   :  { %v559_v42 = vadd.f32 %v558_v40, %v407_v16  ;;  %v778_v43 = vpop.f32.mrb[10].mxu1  ;;  %788 = vmatpush3.bf16.msra.mxu0 %v608_v37 }
 0x1eb   :  { %v570_v44 = vadd.f32 %v778_v43, %v422_v33  ;;  %v561_v45 = vpop.f32.mrb[11].mxu1  ;;  %789 = vmatprep.subr.bf16.mxu0 %v851_v61  ;;  %v599_v48 = vmax.f32 %v567_v39, 0.0 }
 0x1ec   :  { %v562_v47 = vadd.f32 %v561_v45, %v412_v20  ;;  %v597_v50 = vmax.f32 %v559_v42, 0.0 }
 0x1ed   :  { %v600_v49 = vmax.f32 %v570_v44, 0.0 }
 0x1ee   :  { %v598_v51 = vmax.f32 %v562_v47, 0.0  ;;  %790 = vmatpush3.bf16.msra.mxu0 %v609_v36 }
 0x1ef   :  { %v611_v52 = vpack.c.bf16 %v600_v49, %v599_v48  ;;  %791 = vmatprep.subr.bf16.mxu0 %v851_v61 }
 0x1f0   :  { %v610_v54 = vpack.c.bf16 %v598_v51, %v597_v50  ;;  %v781_v55 = vpop.f32.mrb[12].mxu1 }
 0x1f1   :  { %v583_v56 = vadd.f32 %v781_v55, %v437_v53  ;;  %v574_v57 = vpop.f32.mrb[13].mxu1 }
 0x1f2   :  { %v575_v59 = vadd.f32 %v574_v57, %v427_v41  ;;  %v782_v60 = vpop.f32.mrb[14].mxu1  ;;  %792 = vmatpush3.bf16.msra.mxu0 %v610_v54 }
 0x1f3   :  { %v586_v62 = vadd.f32 %v782_v60, %v442_v58  ;;  %v577_v63 = vpop.f32.mrb[15].mxu1  ;;  %793 = vmatprep.subr.bf16.mxu0 %v851_v61  ;;  %v603_v1 = vmax.f32 %v583_v56, 0.0 }
 0x1f4   :  { %v578_v0 = vadd.f32 %v577_v63, %v432_v46  ;;  %v601_v3 = vmax.f32 %v575_v59, 0.0 }
 0x1f5   :  { %v604_v2 = vmax.f32 %v586_v62, 0.0 }
 0x1f6   :  { %v602_v4 = vmax.f32 %v578_v0, 0.0  ;;  %794 = vmatpush3.bf16.msra.mxu0 %v611_v52 }
 0x1f7   :  { %v613_v5 = vpack.c.bf16 %v604_v2, %v603_v1  ;;  %795 = vmatprep.subr.bf16.mxu0 %v851_v61 }
 0x1f8   :  { %v612_v6 = vpack.c.bf16 %v602_v4, %v601_v3 }
 0x1fa   :  { %796 = vmatpush3.bf16.msra.mxu0 %v612_v6 }
 0x1fb   :  { %797 = vmatprep.subr.bf16.mxu0 %v851_v61 }
 0x1fe   :  { %798 = vmatpush3.bf16.msra.mxu0 %v613_v5 }
 0x201   :  { %800 = vmatmul.mubr.bf16.vlgmr.msra.gmra.mrb[16].mxu0 %v605_v7 }
 0x2d4   :  { %v654_v9 = vpop.f32.mrb[16].mxu0 }
 0x2d5   :  { %v655_v10 = vadd.f32 %v654_v9, %v618_v8  ;;  %v801_v11 = vpop.f32.mrb[17].mxu0 }
 0x2d6   :  { %v657_v12 = vpop.f32.mrb[18].mxu0 }
 0x2d7   :  { %660 = vst [vmem:[#allocation2] sm:$0xff] %v655_v10  ;;  %v802_v13 = vpop.f32.mrb[19].mxu0 }
 0x2d8   :  { %837 = shalt.err (!%p834_p4)
}
 0x2d9   :  { %s838_s26 = scalar_lea.hbm %s1083_s7, 128 }
 0x2da   :  { %p839_p5 = scmp.ne.s32.totalorder %s1083_s7, %s838_s26  ;;  %p842_p6 = scmp.lt.u32.totalorder %s838_s26, %s1083_s7 }
 0x2dc   :  { %p844_p7 = pnand %p842_p6, %p839_p5 }
 0x2de   :  { %847 = shalt.err (!%p844_p7)
}
 0x2df   :  { %670 = dma.vmem_to_hbm [thread:$0]  %s668_s1, 128, %s1083_s7, [#allocation3]  }
 0x2e0   :  { %848 = dma.done.wait [#allocation3], 128  }
 0x2e1   :  { %849 = vsyncadd [#allocation3], 4294967168 }
 0x2e2   :  { %674 = vsyncpa [#allocation3], 1 }

</bundles_post_ra>
